<compile_context>
chip_gen: v5e
topology: v5e:2x2
jax: 0.10.0
libtpu: 0.0.40
codegen_flags: <defaults>
</compile_context>

<pallas_src>
import functools

import jax
import jax.numpy as jnp
from jax import lax
from jax.experimental import pallas as pl
from jax.experimental.pallas import tpu as pltpu


def logreg_kernel(x_ref, w_ref, b_ref, o_ref):
    # x_ref: (block_b, D) VMEM; w_ref: (1, D) VMEM; b_ref: (1,) SMEM;
    # o_ref: (1, block_b) VMEM (lane-dense output).
    # Contract x's feature axis directly against w's: (1, D) . (block_b, D) -> (1, block_b)
    z = lax.dot_general(
        w_ref[...], x_ref[...],
        dimension_numbers=(((1,), (1,)), ((), ())),
        preferred_element_type=jnp.float32,
    ) + b_ref[0]
    # Exact sigmoid (the approx-reciprocal variant caused the previous tolerance failure).
    o_ref[...] = (1.0 / (1.0 + jnp.exp(-z))).astype(o_ref.dtype)


def _choose_block_b(B: int, D: int, itemsize: int, target_bytes: int) -> int:
    """Rows per batch tile, sized by bytes (D-aware)."""
    rows = max(target_bytes // max(D * itemsize, 1), 8)
    if rows >= B:
        return B                      # single block spanning the whole batch
    if rows >= 128:
        return (rows // 128) * 128    # lane-dense: unmasked 128-wide output stores
    return max((rows // 8) * 8, 8)    # huge-D fallback (output stores become masked)


@functools.partial(jax.jit, static_argnames=("target_block_bytes",))
def logistic_regression_forward(x, w, b, *, target_block_bytes=6 << 20):
    """x: (B, D), w: (1, D), b: (1,) -> (B,) f32  (== sigmoid(x @ w.T + b).squeeze())."""
    B, D = x.shape
    w = w.astype(x.dtype)
    itemsize = jnp.dtype(x.dtype).itemsize
    block_b = _choose_block_b(B, D, itemsize, target_block_bytes)
    grid = pl.cdiv(B, block_b)

    # double-buffered x + headroom; >= v5e's 16 MiB default scope, well under v7x's 64 MiB.
    x_block_bytes = block_b * D * itemsize
    vmem_limit = int(min(max(2 * x_block_bytes + (4 << 20), 16 << 20), 48 << 20))

    cost = pl.CostEstimate(
        flops=2 * B * D,
        transcendentals=B,
        bytes_accessed=B * D * itemsize + D * itemsize + B * 4,
    )

    out = pl.pallas_call(
        logreg_kernel,
        out_shape=jax.ShapeDtypeStruct((1, B), jnp.float32),
        grid_spec=pl.GridSpec(
            grid=(grid,),
            in_specs=[
                pl.BlockSpec((block_b, D), lambda i: (i, 0)),        # x tiled over batch
                pl.BlockSpec((1, D), lambda i: (0, 0)),              # w resident every step
                pl.BlockSpec(memory_space=pltpu.MemorySpace.SMEM),   # bias scalar in SMEM
            ],
            out_specs=pl.BlockSpec((1, block_b), lambda i: (0, i)),  # lane-dense output
        ),
        compiler_params=pltpu.CompilerParams(
            dimension_semantics=("parallel",),   # batch tiles may shard across TCs (v7x)
            vmem_limit_bytes=vmem_limit,
        ),
        cost_estimate=cost,
    )(x, w, b.reshape(1).astype(jnp.float32))
    # drop ragged padding lanes and the size-1 output-feature axis (== torch .squeeze())
    return out[0, :B]


if __name__ == "__main__":
    # TODO(synk): fit / partial_fit (sklearn SGD / torch optimizer training loops) have no
    # Pallas forward-pass equivalent; only forward() is implemented here.
    key = jax.random.PRNGKey(0)
    kx, kw, kb = jax.random.split(key, 3)

    # Small-shape test (single-block path), shapes consistent with the module.
    batch, input_size = 8, 32
    x = jax.random.normal(kx, (batch, input_size), dtype=jnp.float32)
    bound = 1.0 / (input_size ** 0.5)            # torch.nn.Linear uniform init range
    w = jax.random.uniform(kw, (1, input_size), jnp.float32, -bound, bound)
    b = jax.random.uniform(kb, (1,), jnp.float32, -bound, bound)

    y = logistic_regression_forward(x, w, b)
    jax.block_until_ready(y)
    y_ref = jax.nn.sigmoid(x @ w.T + b).reshape(batch)
    assert y.shape == (batch,)
    assert jnp.allclose(y, y_ref, atol=2e-3), "mismatch vs reference (small batch)"

    # Tiled path: 3 batch tiles of 128 rows, ragged last block, no host-side pad.
    batch2, input2 = 300, 128
    kx2, kw2, kb2 = jax.random.split(jax.random.PRNGKey(1), 3)
    x2 = jax.random.normal(kx2, (batch2, input2), dtype=jnp.float32)
    bound2 = 1.0 / (input2 ** 0.5)
    w2 = jax.random.uniform(kw2, (1, input2), jnp.float32, -bound2, bound2)
    b2 = jax.random.uniform(kb2, (1,), jnp.float32, -bound2, bound2)
    y2 = logistic_regression_forward(x2, w2, b2, target_block_bytes=1 << 16)
    jax.block_until_ready(y2)
    y2_ref = jax.nn.sigmoid(x2 @ w2.T + b2).reshape(batch2)
    assert y2.shape == (batch2,)
    assert jnp.allclose(y2, y2_ref, atol=2e-3), "mismatch vs reference (tiled/ragged batch)"

    print("KERNEL_OK")
</pallas_src>

<mosaic_0001>
module attributes {stable_mosaic.version = 11 : i64} {
  func.func @logreg_kernel(%arg0: i32, %arg1: memref<8x32xf32, #tpu.memory_space<vmem>>, %arg2: memref<1x32xf32, #tpu.memory_space<vmem>>, %arg3: memref<1xf32, #tpu.memory_space<smem>>, %arg4: memref<1x8xf32, #tpu.memory_space<vmem>>) attributes {dimension_semantics = [#tpu.dimension_semantics<parallel>], iteration_bounds = array<i64: 1>, scalar_prefetch = 0 : i64, scratch_operands = 0 : i64, tpu.core_type = #tpu.core_type<tc>, window_params = [{transform_indices = @transform_0, window_bounds = array<i64: 8, 32>}, {pipeline_mode = #tpu.pipeline_mode<synchronous>, transform_indices = @transform_1, window_bounds = array<i64: 1, 32>}, {transform_indices = @transform_2, window_bounds = array<i64: 1>}, {transform_indices = @transform_3, window_bounds = array<i64: 1, 8>}]} {
    %c0 = arith.constant 0 : index
    %c0_0 = arith.constant 0 : index
    %0 = vector.load %arg2[%c0, %c0_0] : memref<1x32xf32, #tpu.memory_space<vmem>>, vector<1x32xf32>
    %c0_1 = arith.constant 0 : index
    %c0_2 = arith.constant 0 : index
    %1 = vector.load %arg1[%c0_1, %c0_2] : memref<8x32xf32, #tpu.memory_space<vmem>>, vector<8x32xf32>
    %cst = arith.constant dense<0.000000e+00> : vector<1x8xf32>
    %2 = tpu.matmul %0, %1, %cst {dimension_numbers = #tpu.dot_dimension_numbers<[1], [1], [0], [0], [0, 0, 1, 0], [], []>} : vector<1x32xf32>, vector<8x32xf32>, vector<1x8xf32> -> vector<1x8xf32>
    %c0_3 = arith.constant 0 : index
    %3 = memref.load %arg3[%c0_3] : memref<1xf32, #tpu.memory_space<smem>>
    %4 = vector.broadcast %3 : f32 to vector<1x8xf32>
    %5 = arith.addf %2, %4 : vector<1x8xf32>
    %cst_4 = arith.constant 0.000000e+00 : f32
    %6 = vector.broadcast %cst_4 : f32 to vector<1x8xf32>
    %7 = arith.subf %6, %5 : vector<1x8xf32>
    %8 = math.exp %7 : vector<1x8xf32>
    %cst_5 = arith.constant 1.000000e+00 : f32
    %9 = vector.broadcast %cst_5 : f32 to vector<1x8xf32>
    %10 = arith.addf %9, %8 : vector<1x8xf32>
    %cst_6 = arith.constant 1.000000e+00 : f32
    %11 = vector.broadcast %cst_6 : f32 to vector<1x8xf32>
    %12 = arith.divf %11, %10 : vector<1x8xf32>
    %c0_7 = arith.constant 0 : index
    %c0_8 = arith.constant 0 : index
    %13 = vector.load %arg4[%c0_7, %c0_8] : memref<1x8xf32, #tpu.memory_space<vmem>>, vector<1x8xf32>
    tpu.vector_store %arg4[%c0_7, %c0_8], %12 {strides = array<i32>} : memref<1x8xf32, #tpu.memory_space<vmem>>, vector<1x8xf32>,
    return
  }
  func.func @transform_0(%arg0: i32) -> (i32, i32) {
    %c0_i32 = arith.constant 0 : i32
    %c0_i32_0 = arith.constant 0 : i32
    return %arg0, %c0_i32 : i32, i32
  }
  func.func @transform_1(%arg0: i32) -> (i32, i32) {
    %c0_i32 = arith.constant 0 : i32
    %c0_i32_0 = arith.constant 0 : i32
    %c0_i32_1 = arith.constant 0 : i32
    return %c0_i32, %c0_i32_0 : i32, i32
  }
  func.func @transform_2(%arg0: i32) -> i32 {
    %c0_i32 = arith.constant 0 : i32
    %c0_i32_0 = arith.constant 0 : i32
    return %c0_i32 : i32
  }
  func.func @transform_3(%arg0: i32) -> (i32, i32) {
    %c0_i32 = arith.constant 0 : i32
    %c0_i32_0 = arith.constant 0 : i32
    return %c0_i32, %arg0 : i32, i32
  }
}

</mosaic_0001>

<bundles_post_ra>
// kernel: logistic_regression_forward.1
= control target key start
LH: loop header
LB: loop body
LE: loop exit
PB: predicated region body
PF: predicated region fallthrough
CT: control target
= control target key end

     0   :  { %9 = vsyncpa [#allocation4], 0  ;;  %s193_s0 = inlined_call_operand.hbm [shape: f32[8,32], index: 0, kind: input, shape index: {}]   ;;  %s194_s1 = inlined_call_operand.vmem [shape: f32[1,32], index: 1, kind: input, shape index: {}]   ;;  %s195_s2 = inlined_call_operand.<no memory space> [shape: f32[1], index: 2, kind: input, shape index: {}]   ;;  %s196_s3 = inlined_call_operand.hbm [shape: f32[1,8], index: 3, kind: output, shape index: {}]  }
   0x1   :  { %10 = vsyncpa [#allocation5], 0  ;;  %s16_s14 = sshll.u32 %s193_s0, 4  ;;  %s159_s15 = smov [#allocation3]   ;;  %s17_s14 = int_to_ptr.hbm [resolvable:$true] %s16_s14 }
   0x2   :  { %s18_s16 = sshll.u32 %s159_s15, 4  ;;  %s19_s16 = int_to_ptr.vmem [resolvable:$true] %s18_s16 }
   0x3   :  { %21 = dma.hbm_to_vmem [thread:$0]  %s17_s14, 128, %s19_s16, [#allocation4]  }
   0x4   :  { %155 = dma.done.wait [#allocation4], 128  }
   0x5   :  { %156 = vsyncadd [#allocation4], 4294967168  ;;  %vm34_vm0 = vcmask 261120   ;;  %v31_v0 = vld [vmem:[#allocation3] sm:$0xff]  ;;  %v33_v2 = vstv %s195_s2  ;;  %s160_s0 = smov [#allocation6]   ;;  %s89_s2 = sshll.u32 %s196_s3, 4  ;;  %s90_s2 = int_to_ptr.hbm [resolvable:$true] %s89_s2 }
   0x6   :  { %99 = vmatpush.xpose.msk.msra.mxu0 %vm34_vm0, %v31_v0  ;;  %v30_v1 = vld [vmem:[%s194_s1] sm:$0x1]  ;;  %s87_s1 = sshll.u32 %s160_s0, 4  ;;  %vm80_vm4 = vcmask 57344   ;;  %s88_s1 = int_to_ptr.vmem [resolvable:$true] %s87_s1 }
   0x9   :  { %100 = vmatmul.msk.f32.vlgmr.msra.gmra.mxu0 %vm34_vm0, %v30_v1 }
  0x86   :  { %v58_v3 = vpop.f32.mrf.mxu0 }
  0x87   :  { %v59_v4 = vadd.f32 %v58_v3, %v33_v2 }
  0x89   :  { %v61_v5 = vsub.f32 0.0, %v59_v4 }
  0x8b   :  { %v62_v6 = vmul.f32 1.442695, %v61_v5 }
  0x8d   :  { %103 = vpow2.f32 %v62_v6 }
  0x93   :  { %v104_v7 = vpop.eup %103 }
  0x94   :  { %v64_v8 = vadd.f32 1.0, %v104_v7 }
  0x96   :  { %105 = vrcp.f32 %v64_v8  ;;  %v76_v12 = vand.u32 2147483648, %v64_v8  ;;  %v74_v14 = vand.u32 2147483647, %v64_v8  ;;  %vm70_vm2 = vweird.f32 %v64_v8 }
  0x98   :  { %v77_v16 = vor.u32 1.1754944e-38, %v76_v12  ;;  %vm75_vm5 = vcmp.eq.f32.partialorder %v74_v14, 8.507059e+37 }
  0x9c   :  { %v106_v9 = vpop.eup %105 }
  0x9d   :  { %v66_v10 = vmul.f32 %v106_v9, %v64_v8  ;;  %vm71_vm1 = vweird.f32 %v106_v9 }
  0x9e   :  { %vm72_vm3 = vmor %vm70_vm2, %vm71_vm1 }
  0x9f   :  { %v67_v11 = vsub.f32 1.0, %v66_v10 }
  0xa1   :  { %v68_v13 = vmul.f32 %v106_v9, %v67_v11 }
  0xa3   :  { %v69_v15 = vadd.f32 %v106_v9, %v68_v13 }
  0xa5   :  { %v73_v17 = vsel %vm72_vm3, %v106_v9, %v69_v15 }
  0xa6   :  { %v78_v18 = vsel %vm75_vm5, %v77_v16, %v73_v17 }
  0xa7   :  { %81 = vst.msk [vmem:[#allocation6] sm:$0x1] %vm80_vm4, %v78_v18 }
  0xa8   :  { %92 = dma.vmem_to_hbm [thread:$0]  %s88_s1, 16, %s90_s2, [#allocation5]  }
  0xa9   :  { %157 = dma.done.wait [#allocation5], 16  }
  0xaa   :  { %158 = vsyncadd [#allocation5], 4294967280 }
  0xab   :  { %97 = vsyncpa [#allocation4], 1 }
  0xac   :  { %98 = vsyncpa [#allocation5], 1 }

</bundles_post_ra>
